<compile_context>
chip_gen: v7x
topology: tpu7x:2x2x1
jax: 0.10.0
libtpu: 0.0.40
codegen_flags: <defaults>
</compile_context>

<pallas_src>
import jax
import jax.numpy as jnp
from jax.experimental import pallas as pl
from jax.experimental.pallas import tpu as pltpu


def ar_forward(x, w, b):
    """AR forward pass.

    x: (B, window, n_multiv) float32
    w: (output_window, window) float32   -- nn.Linear weight
    b: (output_window,) float32          -- nn.Linear bias
    returns: (B, output_window, n_multiv) float32
    """
    B, Wwin, M = x.shape
    O = w.shape[0]
    assert w.shape == (O, Wwin), (w.shape, (O, Wwin))
    assert b.shape == (O,), b.shape

    # Column-vector bias so it broadcasts over the lane (n_multiv) axis in-kernel.
    b_col = b.reshape(O, 1)

    def kernel(x_ref, w_ref, b_ref, o_ref):
        w_blk = w_ref[...]          # (O, window)  -- resident in VMEM/vregs
        bias = b_ref[...]           # (O, 1)       -- broadcasts over n_multiv lanes
        for i in range(B):          # static unroll: B is tiny, single launch
            y = jnp.dot(w_blk, x_ref[i], preferred_element_type=jnp.float32) + bias
            o_ref[i] = y.astype(o_ref.dtype)

    vmem = pl.BlockSpec(memory_space=pltpu.MemorySpace.VMEM)
    return pl.pallas_call(
        kernel,
        in_specs=[vmem, vmem, vmem],           # whole arrays as single VMEM blocks
        out_specs=vmem,
        out_shape=jax.ShapeDtypeStruct((B, O, M), x.dtype),
    )(x, w, b_col)


if __name__ == "__main__":
    # Small shapes consistent with the module: batch=2, window=16, n_multiv=8,
    # output_window=4.
    B, window, n_multiv, output_window = 2, 16, 8, 4

    key = jax.random.PRNGKey(0)
    kx, kw, kb = jax.random.split(key, 3)
    x = jax.random.normal(kx, (B, window, n_multiv), jnp.float32)
    # nn.Linear(window, output_window): weight (output_window, window), bias (output_window,)
    w = jax.random.normal(kw, (output_window, window), jnp.float32) * (1.0 / (window ** 0.5))
    b = jax.random.normal(kb, (output_window,), jnp.float32) * 0.1

    fwd = jax.jit(ar_forward)
    out = jax.block_until_ready(fwd(x, w, b))

    # Pure-JAX reference of the PyTorch forward (transpose -> linear -> transpose).
    ref = jnp.swapaxes(jnp.swapaxes(x, 1, 2) @ w.T + b, 1, 2)

    assert out.shape == (B, output_window, n_multiv), out.shape
    assert jnp.all(jnp.isfinite(out))
    assert jnp.allclose(out, ref, atol=1e-5, rtol=1e-5), float(jnp.max(jnp.abs(out - ref)))
    print("KERNEL_OK")
</pallas_src>

<mosaic_0001>
module attributes {stable_mosaic.version = 11 : i64} {
  func.func @kernel(%arg0: memref<2x16x8xf32, #tpu.memory_space<vmem>>, %arg1: memref<4x16xf32, #tpu.memory_space<vmem>>, %arg2: memref<4x1xf32, #tpu.memory_space<vmem>>, %arg3: memref<2x4x8xf32, #tpu.memory_space<vmem>>) attributes {dimension_semantics = [], scalar_prefetch = 0 : i64, scratch_operands = 0 : i64, tpu.core_type = #tpu.core_type<tc>} {
    %c0 = arith.constant 0 : index
    %c0_0 = arith.constant 0 : index
    %0 = vector.load %arg1[%c0, %c0_0] : memref<4x16xf32, #tpu.memory_space<vmem>>, vector<4x16xf32>
    %c0_1 = arith.constant 0 : index
    %c0_2 = arith.constant 0 : index
    %1 = vector.load %arg2[%c0_1, %c0_2] : memref<4x1xf32, #tpu.memory_space<vmem>>, vector<4x1xf32>
    %c0_3 = arith.constant 0 : index
    %c0_4 = arith.constant 0 : index
    %c0_5 = arith.constant 0 : index
    %2 = vector.load %arg0[%c0_3, %c0_4, %c0_5] : memref<2x16x8xf32, #tpu.memory_space<vmem>>, vector<1x16x8xf32>
    %3 = vector.shape_cast %2 : vector<1x16x8xf32> to vector<16x8xf32>
    %cst = arith.constant dense<0.000000e+00> : vector<4x8xf32>
    %4 = tpu.matmul %0, %3, %cst {dimension_numbers = #tpu.dot_dimension_numbers<[1], [0], [0], [1], [0, 0, 1, 1], [], []>} : vector<4x16xf32>, vector<16x8xf32>, vector<4x8xf32> -> vector<4x8xf32>
    %5 = vector.broadcast %1 : vector<4x1xf32> to vector<4x8xf32>
    %6 = arith.addf %4, %5 : vector<4x8xf32>
    %c0_6 = arith.constant 0 : index
    %c0_7 = arith.constant 0 : index
    %c0_8 = arith.constant 0 : index
    %7 = vector.load %arg3[%c0_6, %c0_7, %c0_8] : memref<2x4x8xf32, #tpu.memory_space<vmem>>, vector<1x4x8xf32>
    %8 = vector.shape_cast %7 : vector<1x4x8xf32> to vector<4x8xf32>
    %9 = vector.shape_cast %6 : vector<4x8xf32> to vector<1x4x8xf32>
    tpu.vector_store %arg3[%c0_6, %c0_7, %c0_8], %9 {strides = array<i32>} : memref<2x4x8xf32, #tpu.memory_space<vmem>>, vector<1x4x8xf32>,
    %c1 = arith.constant 1 : index
    %c0_9 = arith.constant 0 : index
    %c0_10 = arith.constant 0 : index
    %10 = vector.load %arg0[%c1, %c0_9, %c0_10] : memref<2x16x8xf32, #tpu.memory_space<vmem>>, vector<1x16x8xf32>
    %11 = vector.shape_cast %10 : vector<1x16x8xf32> to vector<16x8xf32>
    %cst_11 = arith.constant dense<0.000000e+00> : vector<4x8xf32>
    %12 = tpu.matmul %0, %11, %cst_11 {dimension_numbers = #tpu.dot_dimension_numbers<[1], [0], [0], [1], [0, 0, 1, 1], [], []>} : vector<4x16xf32>, vector<16x8xf32>, vector<4x8xf32> -> vector<4x8xf32>
    %13 = vector.broadcast %1 : vector<4x1xf32> to vector<4x8xf32>
    %14 = arith.addf %12, %13 : vector<4x8xf32>
    %c1_12 = arith.constant 1 : index
    %c0_13 = arith.constant 0 : index
    %c0_14 = arith.constant 0 : index
    %15 = vector.load %arg3[%c1_12, %c0_13, %c0_14] : memref<2x4x8xf32, #tpu.memory_space<vmem>>, vector<1x4x8xf32>
    %16 = vector.shape_cast %15 : vector<1x4x8xf32> to vector<4x8xf32>
    %17 = vector.shape_cast %14 : vector<4x8xf32> to vector<1x4x8xf32>
    tpu.vector_store %arg3[%c1_12, %c0_13, %c0_14], %17 {strides = array<i32>} : memref<2x4x8xf32, #tpu.memory_space<vmem>>, vector<1x4x8xf32>,
    return
  }
}

</mosaic_0001>

<bundles_post_ra>
// kernel: ar_forward.1
= control target key start
LH: loop header
LB: loop body
LE: loop exit
PB: predicated region body
PF: predicated region fallthrough
CT: control target
= control target key end

     0   :  { %v253_v3 = vmov 0.0|0.0   ;;  %vm254_vm0 = vmmov 0   ;;  %v255_v7 = vmov 0.0   ;;  %s310_s0 = inlined_call_operand.vmem [shape: f32[2,16,8], index: 0, kind: input, shape index: {}]   ;;  %s311_s1 = inlined_call_operand.vmem [shape: f32[4,16], index: 1, kind: input, shape index: {}]   ;;  %s312_s2 = inlined_call_operand.vmem [shape: f32[4,1], index: 2, kind: input, shape index: {}]   ;;  %s313_s3 = inlined_call_operand.hbm [shape: f32[2,4,8], index: 3, kind: output, shape index: {}]  }
   0x1   :  { %v17_v0 = vld [vmem:[%s310_s0] sm:$0xff]  ;;  %v18_v1 = vld [vmem:[%s310_s0 + $0x8] sm:$0xff]  ;;  %v192_v2 = vld [vmem:[%s310_s0 + $0x10] sm:$0xff]  ;;  %215 = vmatprep.subr.bf16.mxu0 %v253_v3  ;;  %218 = vmatprep.subr.bf16.mxu1 %v253_v3 }
   0x2   :  { %v216_v4 = vpack.c.bf16 %v18_v1, %v17_v0  ;;  %v193_v5 = vld [vmem:[%s310_s0 + $0x18] sm:$0xff]  ;;  %205 = vmatprep.mubr.msk.f32.mxu0 %vm254_vm0, %v255_v7  ;;  %212 = vmatprep.mubr.msk.f32.mxu1 %vm254_vm0, %v255_v7  ;;  %v16_v8 = vld [vmem:[%s312_s2] sm:$0xf] }
   0x3   :  { %v219_v6 = vpack.c.bf16 %v193_v5, %v192_v2 }
   0x4   :  { %8 = vsyncpa [#allocation3], 0  ;;  %217 = vmatpush3.bf16.msra.mxu0 %v216_v4  ;;  %v15_v9 = vld [vmem:[%s311_s1] sm:$0xf]  ;;  %vm24_vm1 = vcmask 130048   ;;  %v256_v10 = vmov 0  }
   0x5   :  { %228 = vset.pattern.permute.xlu0 %v256_v10  ;;  %220 = vmatpush3.bf16.msra.mxu1 %v219_v6  ;;  %s257_s0 = smov [#allocation2]   ;;  %vm98_vm2 = vcmask 60416  }
   0x6   :  { %21 = vperm.xlu0 %228, %v16_v8   ;;  %s180_s24 = sshll.u32 %s257_s0, 4  ;;  %s181_s24 = int_to_ptr.vmem [resolvable:$true] %s180_s24 }
   0x7   :  { %206 = vmatmul.mubr.msk.f32.vlgmr.msra.gmra.mrb[0].mxu0 %vm24_vm1, %v15_v9  ;;  %s229_s1 = scalar_lea.vmem %s181_s24, 128  ;;  %p234_p1 = scmp.lt.s32.totalorder %s181_s24, %s181_s24 }
   0x8   :  { %213 = vmatmul.mubr.msk.f32.vlgmr.msra.gmra.mrb[0].mxu1 %vm24_vm1, %v15_v9  ;;  %p230_p0 = scmp.ne.s32.totalorder %s181_s24, %s229_s1  ;;  %p235_p2 = scmp.lt.s32.totalorder %s229_s1, %s229_s1 }
   0xa   :  { %p236_p3 = por %p235_p2, %p234_p1 }
   0xc   :  { %p237_p4 = pnand %p236_p3, %p230_p0 }
  0x85   :  { %v22_v11 = vpop.permute.xlu0 %21 }
  0xda   :  { %v94_v12 = vpop.f32.mrb[0].mxu0 }
  0xdb   :  { %v95_v13 = vadd.f32 %v94_v12, %v22_v11  ;;  %v169_v14 = vpop.f32.mrb[0].mxu1  ;;  %v207_v15 = vpop.f32.mrb[1].mxu0 }
  0xdc   :  { %v170_v16 = vadd.f32 %v169_v14, %v22_v11  ;;  %v214_v17 = vpop.f32.mrb[1].mxu1 }
  0xdd   :  { %99 = vst.msk [vmem:[#allocation2] sm:$0xf] %vm98_vm2, %v95_v13 }
  0xde   :  { %174 = vst.msk [vmem:[#allocation2 + $0x4] sm:$0xf] %vm98_vm2, %v170_v16 }
  0xdf   :  { %240 = shalt.err (!%p237_p4)
}
  0xe0   :  { %s241_s26 = scalar_lea.hbm %s313_s3, 128 }
  0xe1   :  { %p242_p5 = scmp.ne.s32.totalorder %s313_s3, %s241_s26  ;;  %p245_p6 = scmp.lt.u32.totalorder %s241_s26, %s313_s3 }
  0xe3   :  { %p247_p7 = pnand %p245_p6, %p242_p5 }
  0xe5   :  { %250 = shalt.err (!%p247_p7)
}
  0xe6   :  { %s258_s4 = smov 64   ;;  %s259_s5 = smov 4  }
  0xe7   :  { %186 = dma.vmem_to_hbm [thread:$0]  %s181_s24, 128, %s313_s3, [#allocation3], %s258_s4, %s258_s4, %s259_s5  }
  0xe8   :  { %251 = dma.done.wait [#allocation3], 128  }
  0xe9   :  { %252 = vsyncadd [#allocation3], 4294967168 }
  0xea   :  { %190 = vsyncpa [#allocation3], 1 }

</bundles_post_ra>
